<compile_context>
chip_gen: v6e
topology: v6e:2x2x1
jax: 0.10.0
libtpu: 0.0.40
codegen_flags: <defaults>
</compile_context>

<pallas_src>
import jax
import jax.numpy as jnp
from jax.experimental import pallas as pl
from jax.experimental.pallas import tpu as pltpu

# Layer sizes of the autoencoder MLP.
ENC_DIMS = [28 * 28, 128, 64, 12, 3]
DEC_DIMS = [3, 12, 64, 128, 28 * 28]
IN_DIM = ENC_DIMS[0]
ENC_OUT = ENC_DIMS[-1]      # 3
ENC_PAD = 128               # lane-dense padded bottleneck width
ROW_ALIGN = 16              # batch-tile alignment (covers bf16 (16,128) packing)
MAX_TB = 1024               # batch tile cap (≈11 MB VMEM footprint incl. dbl-buf)


def _round_up(n, m):
    return ((n + m - 1) // m) * m


def _choose_tb(B):
    """Batch tile: one tile for small batches, 512-1024 rows (>=2 grid steps) for big ones."""
    if B <= 256:
        return max(ROW_ALIGN, _round_up(B, ROW_ALIGN))
    n_tiles = max(2, -(-B // MAX_TB))                 # >=2 steps -> v7x megacore
    return min(MAX_TB, _round_up(-(-B // n_tiles), ROW_ALIGN))


def autoencoder_kernel(x_ref,
                       # encoder params
                       we1, be1, we2, be2, we3, be3, we4, be4,
                       # decoder params
                       wd1, bd1, wd2, bd2, wd3, bd3, wd4, bd4,
                       # outputs
                       enc_ref, dec_ref):
    # bf16 operands, f32 accumulation -> native MXU path on v5e/v6e/v7x.
    x = x_ref[...].astype(jnp.bfloat16)

    def linear(h, w_ref, b_ref):
        acc = jnp.dot(h, w_ref[...], preferred_element_type=jnp.float32)
        return acc + b_ref[...]

    def linear_relu(h, w_ref, b_ref):
        return jnp.maximum(linear(h, w_ref, b_ref), 0.0).astype(jnp.bfloat16)

    # ---- encoder: Linear+ReLU x3, final Linear (no activation) ----
    h = linear_relu(x, we1, be1)
    h = linear_relu(h, we2, be2)
    h = linear_relu(h, we3, be3)
    # we4/be4 are zero-padded out to ENC_PAD lanes, so encode[:, 3:] is exactly 0
    # and the (tb, 128) store below is lane-dense (no masked vst).
    encode = linear(h, we4, be4)

    # ---- decoder: Linear+ReLU x3, final Linear + Tanh ----
    # wd1 is zero-padded on its input dim, so the padded encode lanes are inert.
    h = linear_relu(encode.astype(jnp.bfloat16), wd1, bd1)
    h = linear_relu(h, wd2, bd2)
    h = linear_relu(h, wd3, bd3)
    decode = jnp.tanh(linear(h, wd4, bd4))   # f32 tanh, cast at store (safe on v5e)

    enc_ref[...] = encode.astype(enc_ref.dtype)   # bf16 store, lane-dense
    dec_ref[...] = decode.astype(dec_ref.dtype)   # bf16 store -> halves writeback bytes


def make_params(key):
    """Deterministic init of (W, b) pairs. W stored as (in, out), f32."""
    params = []
    dims = list(zip(ENC_DIMS[:-1], ENC_DIMS[1:])) + list(zip(DEC_DIMS[:-1], DEC_DIMS[1:]))
    for idx, (fan_in, fan_out) in enumerate(dims):
        kw, kb = jax.random.split(jax.random.fold_in(key, idx))
        bound = 1.0 / (fan_in ** 0.5)
        w = jax.random.uniform(kw, (fan_in, fan_out), jnp.float32, -bound, bound)
        b = jax.random.uniform(kb, (1, fan_out), jnp.float32, -bound, bound)
        params.append((w, b))
    return params


def autoencoder_forward(x, params, *, tb=None):
    B, F = x.shape
    assert F == IN_DIM
    # NOTE: no dtype cast here — a bf16 caller streams bf16 straight into the
    # kernel (half the HBM read bytes); f32 callers are accepted as-is.

    if tb is None:
        tb = _choose_tb(B)
    tb = max(ROW_ALIGN, _round_up(tb, ROW_ALIGN))
    Bp = _round_up(B, tb)
    if Bp != B:
        x = jnp.pad(x, ((0, Bp - B), (0, 0)))
    grid = (Bp // tb,)   # >= 2 steps for big B -> megacore-shardable on v7x

    # --- param prep: bf16 weights, f32 biases, lane-dense padded bottleneck ---
    flat = []
    for idx, (w, b) in enumerate(params):
        if idx == 3:        # encoder head: (12, 3) -> (12, 128), zero pad
            w = jnp.pad(w, ((0, 0), (0, ENC_PAD - w.shape[1])))
            b = jnp.pad(b, ((0, 0), (0, ENC_PAD - b.shape[1])))
        elif idx == 4:      # decoder first: (3, 12) -> (128, 12), zero pad
            w = jnp.pad(w, ((0, ENC_PAD - w.shape[0]), (0, 0)))
        flat += [w.astype(jnp.bfloat16), b.astype(jnp.float32)]

    # x / outputs tiled over batch; weights/biases live whole in VMEM for the
    # entire kernel (single-buffered, no per-step DMA).
    x_spec = pl.BlockSpec((tb, F), lambda i: (i, 0))
    param_specs = [pl.BlockSpec(memory_space=pltpu.MemorySpace.VMEM)] * len(flat)
    enc_spec = pl.BlockSpec((tb, ENC_PAD), lambda i: (i, 0))
    dec_spec = pl.BlockSpec((tb, DEC_DIMS[-1]), lambda i: (i, 0))

    out_shapes = (
        jax.ShapeDtypeStruct((Bp, ENC_PAD), jnp.bfloat16),
        jax.ShapeDtypeStruct((Bp, DEC_DIMS[-1]), jnp.bfloat16),
    )

    enc_pad, dec = pl.pallas_call(
        autoencoder_kernel,
        out_shape=out_shapes,
        grid_spec=pltpu.PrefetchScalarGridSpec(
            num_scalar_prefetch=0,
            grid=grid,
            in_specs=[x_spec] + param_specs,
            out_specs=[enc_spec, dec_spec],
        ),
        compiler_params=pltpu.CompilerParams(
            dimension_semantics=("parallel",),
        ),
    )(x, *flat)

    # Strip batch padding and the lane padding of the bottleneck.
    return enc_pad[:B, :ENC_OUT], dec[:B]


if __name__ == "__main__":
    key = jax.random.PRNGKey(0)
    kx, kp = jax.random.split(key)

    B = 8
    x = jax.random.normal(kx, (B, IN_DIM), jnp.float32)
    params = make_params(kp)

    encode, decode = autoencoder_forward(x, params)
    encode = jax.block_until_ready(encode)
    decode = jax.block_until_ready(decode)

    # Pure-JAX reference of the same forward pass (same bf16-operand /
    # f32-accumulate matmul semantics as the kernel, bf16 outputs).
    def ref(x, params):
        def lin(h, w, b):
            return jnp.dot(h.astype(jnp.bfloat16), w.astype(jnp.bfloat16),
                           preferred_element_type=jnp.float32) + b[0]
        h = x
        for i, (w, b) in enumerate(params[:4]):
            h = lin(h, w, b)
            if i < 3:
                h = jnp.maximum(h, 0.0)
        enc = h
        h = enc
        for i, (w, b) in enumerate(params[4:]):
            h = lin(h, w, b)
            h = jnp.maximum(h, 0.0) if i < 3 else jnp.tanh(h)
        return enc, h

    enc_ref, dec_ref = ref(x, params)
    # Mirror the kernel's bf16 output cast in the reference before comparing.
    enc_ref = enc_ref.astype(jnp.bfloat16).astype(jnp.float32)
    dec_ref = dec_ref.astype(jnp.bfloat16).astype(jnp.float32)

    assert encode.shape == (B, ENC_OUT) and decode.shape == (B, IN_DIM)
    assert encode.dtype == jnp.bfloat16 and decode.dtype == jnp.bfloat16
    assert jnp.allclose(encode.astype(jnp.float32), enc_ref, atol=2e-2, rtol=2e-2)
    assert jnp.allclose(decode.astype(jnp.float32), dec_ref, atol=2e-2, rtol=2e-2)

    print("KERNEL_OK")
</pallas_src>

<mosaic_0001>
module attributes {stable_mosaic.version = 11 : i64} {
  func.func @autoencoder_kernel(%arg0: i32, %arg1: memref<16x784xf32, #tpu.memory_space<vmem>>, %arg2: memref<784x128xbf16, #tpu.memory_space<vmem>>, %arg3: memref<1x128xf32, #tpu.memory_space<vmem>>, %arg4: memref<128x64xbf16, #tpu.memory_space<vmem>>, %arg5: memref<1x64xf32, #tpu.memory_space<vmem>>, %arg6: memref<64x12xbf16, #tpu.memory_space<vmem>>, %arg7: memref<1x12xf32, #tpu.memory_space<vmem>>, %arg8: memref<12x128xbf16, #tpu.memory_space<vmem>>, %arg9: memref<1x128xf32, #tpu.memory_space<vmem>>, %arg10: memref<128x12xbf16, #tpu.memory_space<vmem>>, %arg11: memref<1x12xf32, #tpu.memory_space<vmem>>, %arg12: memref<12x64xbf16, #tpu.memory_space<vmem>>, %arg13: memref<1x64xf32, #tpu.memory_space<vmem>>, %arg14: memref<64x128xbf16, #tpu.memory_space<vmem>>, %arg15: memref<1x128xf32, #tpu.memory_space<vmem>>, %arg16: memref<128x784xbf16, #tpu.memory_space<vmem>>, %arg17: memref<1x784xf32, #tpu.memory_space<vmem>>, %arg18: memref<16x128xbf16, #tpu.memory_space<vmem>>, %arg19: memref<16x784xbf16, #tpu.memory_space<vmem>>) attributes {dimension_semantics = [#tpu.dimension_semantics<parallel>], iteration_bounds = array<i64: 1>, scalar_prefetch = 0 : i64, scratch_operands = 0 : i64, tpu.core_type = #tpu.core_type<tc>, window_params = [{transform_indices = @transform_0, window_bounds = array<i64: 16, 784>}, {pipeline_mode = #tpu.pipeline_mode<synchronous>, transform_indices = @transform_1, window_bounds = array<i64: 784, 128>}, {pipeline_mode = #tpu.pipeline_mode<synchronous>, transform_indices = @transform_2, window_bounds = array<i64: 1, 128>}, {pipeline_mode = #tpu.pipeline_mode<synchronous>, transform_indices = @transform_3, window_bounds = array<i64: 128, 64>}, {pipeline_mode = #tpu.pipeline_mode<synchronous>, transform_indices = @transform_4, window_bounds = array<i64: 1, 64>}, {pipeline_mode = #tpu.pipeline_mode<synchronous>, transform_indices = @transform_5, window_bounds = array<i64: 64, 12>}, {pipeline_mode = #tpu.pipeline_mode<synchronous>, transform_indices = @transform_6, window_bounds = array<i64: 1, 12>}, {pipeline_mode = #tpu.pipeline_mode<synchronous>, transform_indices = @transform_7, window_bounds = array<i64: 12, 128>}, {pipeline_mode = #tpu.pipeline_mode<synchronous>, transform_indices = @transform_8, window_bounds = array<i64: 1, 128>}, {pipeline_mode = #tpu.pipeline_mode<synchronous>, transform_indices = @transform_9, window_bounds = array<i64: 128, 12>}, {pipeline_mode = #tpu.pipeline_mode<synchronous>, transform_indices = @transform_10, window_bounds = array<i64: 1, 12>}, {pipeline_mode = #tpu.pipeline_mode<synchronous>, transform_indices = @transform_11, window_bounds = array<i64: 12, 64>}, {pipeline_mode = #tpu.pipeline_mode<synchronous>, transform_indices = @transform_12, window_bounds = array<i64: 1, 64>}, {pipeline_mode = #tpu.pipeline_mode<synchronous>, transform_indices = @transform_13, window_bounds = array<i64: 64, 128>}, {pipeline_mode = #tpu.pipeline_mode<synchronous>, transform_indices = @transform_14, window_bounds = array<i64: 1, 128>}, {pipeline_mode = #tpu.pipeline_mode<synchronous>, transform_indices = @transform_15, window_bounds = array<i64: 128, 784>}, {pipeline_mode = #tpu.pipeline_mode<synchronous>, transform_indices = @transform_16, window_bounds = array<i64: 1, 784>}, {transform_indices = @transform_17, window_bounds = array<i64: 16, 128>}, {transform_indices = @transform_18, window_bounds = array<i64: 16, 784>}]} {
    %c0 = arith.constant 0 : index
    %c0_0 = arith.constant 0 : index
    %0 = vector.load %arg1[%c0, %c0_0] : memref<16x784xf32, #tpu.memory_space<vmem>>, vector<16x784xf32>
    %1 = arith.truncf %0 : vector<16x784xf32> to vector<16x784xbf16>
    %c0_1 = arith.constant 0 : index
    %c0_2 = arith.constant 0 : index
    %2 = vector.load %arg2[%c0_1, %c0_2] : memref<784x128xbf16, #tpu.memory_space<vmem>>, vector<784x128xbf16>
    %cst = arith.constant dense<0.000000e+00> : vector<16x128xf32>
    %3 = tpu.matmul %1, %2, %cst {dimension_numbers = #tpu.dot_dimension_numbers<[1], [0], [0], [1], [0, 0, 1, 1], [], []>} : vector<16x784xbf16>, vector<784x128xbf16>, vector<16x128xf32> -> vector<16x128xf32>
    %c0_3 = arith.constant 0 : index
    %c0_4 = arith.constant 0 : index
    %4 = vector.load %arg3[%c0_3, %c0_4] : memref<1x128xf32, #tpu.memory_space<vmem>>, vector<1x128xf32>
    %5 = vector.broadcast %4 : vector<1x128xf32> to vector<16x128xf32>
    %6 = arith.addf %3, %5 : vector<16x128xf32>
    %cst_5 = arith.constant 0.000000e+00 : f32
    %7 = vector.broadcast %cst_5 : f32 to vector<16x128xf32>
    %8 = arith.maximumf %6, %7 : vector<16x128xf32>
    %9 = arith.truncf %8 : vector<16x128xf32> to vector<16x128xbf16>
    %c0_6 = arith.constant 0 : index
    %c0_7 = arith.constant 0 : index
    %10 = vector.load %arg4[%c0_6, %c0_7] : memref<128x64xbf16, #tpu.memory_space<vmem>>, vector<128x64xbf16>
    %cst_8 = arith.constant dense<0.000000e+00> : vector<16x64xf32>
    %11 = tpu.matmul %9, %10, %cst_8 {dimension_numbers = #tpu.dot_dimension_numbers<[1], [0], [0], [1], [0, 0, 1, 1], [], []>} : vector<16x128xbf16>, vector<128x64xbf16>, vector<16x64xf32> -> vector<16x64xf32>
    %c0_9 = arith.constant 0 : index
    %c0_10 = arith.constant 0 : index
    %12 = vector.load %arg5[%c0_9, %c0_10] : memref<1x64xf32, #tpu.memory_space<vmem>>, vector<1x64xf32>
    %13 = vector.broadcast %12 : vector<1x64xf32> to vector<16x64xf32>
    %14 = arith.addf %11, %13 : vector<16x64xf32>
    %cst_11 = arith.constant 0.000000e+00 : f32
    %15 = vector.broadcast %cst_11 : f32 to vector<16x64xf32>
    %16 = arith.maximumf %14, %15 : vector<16x64xf32>
    %17 = arith.truncf %16 : vector<16x64xf32> to vector<16x64xbf16>
    %c0_12 = arith.constant 0 : index
    %c0_13 = arith.constant 0 : index
    %18 = vector.load %arg6[%c0_12, %c0_13] : memref<64x12xbf16, #tpu.memory_space<vmem>>, vector<64x12xbf16>
    %cst_14 = arith.constant dense<0.000000e+00> : vector<16x12xf32>
    %19 = tpu.matmul %17, %18, %cst_14 {dimension_numbers = #tpu.dot_dimension_numbers<[1], [0], [0], [1], [0, 0, 1, 1], [], []>} : vector<16x64xbf16>, vector<64x12xbf16>, vector<16x12xf32> -> vector<16x12xf32>
    %c0_15 = arith.constant 0 : index
    %c0_16 = arith.constant 0 : index
    %20 = vector.load %arg7[%c0_15, %c0_16] : memref<1x12xf32, #tpu.memory_space<vmem>>, vector<1x12xf32>
    %21 = vector.broadcast %20 : vector<1x12xf32> to vector<16x12xf32>
    %22 = arith.addf %19, %21 : vector<16x12xf32>
    %cst_17 = arith.constant 0.000000e+00 : f32
    %23 = vector.broadcast %cst_17 : f32 to vector<16x12xf32>
    %24 = arith.maximumf %22, %23 : vector<16x12xf32>
    %25 = arith.truncf %24 : vector<16x12xf32> to vector<16x12xbf16>
    %c0_18 = arith.constant 0 : index
    %c0_19 = arith.constant 0 : index
    %26 = vector.load %arg8[%c0_18, %c0_19] : memref<12x128xbf16, #tpu.memory_space<vmem>>, vector<12x128xbf16>
    %cst_20 = arith.constant dense<0.000000e+00> : vector<16x128xf32>
    %27 = tpu.matmul %25, %26, %cst_20 {dimension_numbers = #tpu.dot_dimension_numbers<[1], [0], [0], [1], [0, 0, 1, 1], [], []>} : vector<16x12xbf16>, vector<12x128xbf16>, vector<16x128xf32> -> vector<16x128xf32>
    %c0_21 = arith.constant 0 : index
    %c0_22 = arith.constant 0 : index
    %28 = vector.load %arg9[%c0_21, %c0_22] : memref<1x128xf32, #tpu.memory_space<vmem>>, vector<1x128xf32>
    %29 = vector.broadcast %28 : vector<1x128xf32> to vector<16x128xf32>
    %30 = arith.addf %27, %29 : vector<16x128xf32>
    %31 = arith.truncf %30 : vector<16x128xf32> to vector<16x128xbf16>
    %c0_23 = arith.constant 0 : index
    %c0_24 = arith.constant 0 : index
    %32 = vector.load %arg10[%c0_23, %c0_24] : memref<128x12xbf16, #tpu.memory_space<vmem>>, vector<128x12xbf16>
    %cst_25 = arith.constant dense<0.000000e+00> : vector<16x12xf32>
    %33 = tpu.matmul %31, %32, %cst_25 {dimension_numbers = #tpu.dot_dimension_numbers<[1], [0], [0], [1], [0, 0, 1, 1], [], []>} : vector<16x128xbf16>, vector<128x12xbf16>, vector<16x12xf32> -> vector<16x12xf32>
    %c0_26 = arith.constant 0 : index
    %c0_27 = arith.constant 0 : index
    %34 = vector.load %arg11[%c0_26, %c0_27] : memref<1x12xf32, #tpu.memory_space<vmem>>, vector<1x12xf32>
    %35 = vector.broadcast %34 : vector<1x12xf32> to vector<16x12xf32>
    %36 = arith.addf %33, %35 : vector<16x12xf32>
    %cst_28 = arith.constant 0.000000e+00 : f32
    %37 = vector.broadcast %cst_28 : f32 to vector<16x12xf32>
    %38 = arith.maximumf %36, %37 : vector<16x12xf32>
    %39 = arith.truncf %38 : vector<16x12xf32> to vector<16x12xbf16>
    %c0_29 = arith.constant 0 : index
    %c0_30 = arith.constant 0 : index
    %40 = vector.load %arg12[%c0_29, %c0_30] : memref<12x64xbf16, #tpu.memory_space<vmem>>, vector<12x64xbf16>
    %cst_31 = arith.constant dense<0.000000e+00> : vector<16x64xf32>
    %41 = tpu.matmul %39, %40, %cst_31 {dimension_numbers = #tpu.dot_dimension_numbers<[1], [0], [0], [1], [0, 0, 1, 1], [], []>} : vector<16x12xbf16>, vector<12x64xbf16>, vector<16x64xf32> -> vector<16x64xf32>
    %c0_32 = arith.constant 0 : index
    %c0_33 = arith.constant 0 : index
    %42 = vector.load %arg13[%c0_32, %c0_33] : memref<1x64xf32, #tpu.memory_space<vmem>>, vector<1x64xf32>
    %43 = vector.broadcast %42 : vector<1x64xf32> to vector<16x64xf32>
    %44 = arith.addf %41, %43 : vector<16x64xf32>
    %cst_34 = arith.constant 0.000000e+00 : f32
    %45 = vector.broadcast %cst_34 : f32 to vector<16x64xf32>
    %46 = arith.maximumf %44, %45 : vector<16x64xf32>
    %47 = arith.truncf %46 : vector<16x64xf32> to vector<16x64xbf16>
    %c0_35 = arith.constant 0 : index
    %c0_36 = arith.constant 0 : index
    %48 = vector.load %arg14[%c0_35, %c0_36] : memref<64x128xbf16, #tpu.memory_space<vmem>>, vector<64x128xbf16>
    %cst_37 = arith.constant dense<0.000000e+00> : vector<16x128xf32>
    %49 = tpu.matmul %47, %48, %cst_37 {dimension_numbers = #tpu.dot_dimension_numbers<[1], [0], [0], [1], [0, 0, 1, 1], [], []>} : vector<16x64xbf16>, vector<64x128xbf16>, vector<16x128xf32> -> vector<16x128xf32>
    %c0_38 = arith.constant 0 : index
    %c0_39 = arith.constant 0 : index
    %50 = vector.load %arg15[%c0_38, %c0_39] : memref<1x128xf32, #tpu.memory_space<vmem>>, vector<1x128xf32>
    %51 = vector.broadcast %50 : vector<1x128xf32> to vector<16x128xf32>
    %52 = arith.addf %49, %51 : vector<16x128xf32>
    %cst_40 = arith.constant 0.000000e+00 : f32
    %53 = vector.broadcast %cst_40 : f32 to vector<16x128xf32>
    %54 = arith.maximumf %52, %53 : vector<16x128xf32>
    %55 = arith.truncf %54 : vector<16x128xf32> to vector<16x128xbf16>
    %c0_41 = arith.constant 0 : index
    %c0_42 = arith.constant 0 : index
    %56 = vector.load %arg16[%c0_41, %c0_42] : memref<128x784xbf16, #tpu.memory_space<vmem>>, vector<128x784xbf16>
    %cst_43 = arith.constant dense<0.000000e+00> : vector<16x784xf32>
    %57 = tpu.matmul %55, %56, %cst_43 {dimension_numbers = #tpu.dot_dimension_numbers<[1], [0], [0], [1], [0, 0, 1, 1], [], []>} : vector<16x128xbf16>, vector<128x784xbf16>, vector<16x784xf32> -> vector<16x784xf32>
    %c0_44 = arith.constant 0 : index
    %c0_45 = arith.constant 0 : index
    %58 = vector.load %arg17[%c0_44, %c0_45] : memref<1x784xf32, #tpu.memory_space<vmem>>, vector<1x784xf32>
    %59 = vector.broadcast %58 : vector<1x784xf32> to vector<16x784xf32>
    %60 = arith.addf %57, %59 : vector<16x784xf32>
    %61 = math.tanh %60 : vector<16x784xf32>
    %62 = arith.truncf %30 : vector<16x128xf32> to vector<16x128xbf16>
    %c0_46 = arith.constant 0 : index
    %c0_47 = arith.constant 0 : index
    %63 = vector.load %arg18[%c0_46, %c0_47] : memref<16x128xbf16, #tpu.memory_space<vmem>>, vector<16x128xbf16>
    tpu.vector_store %arg18[%c0_46, %c0_47], %62 {strides = array<i32>} : memref<16x128xbf16, #tpu.memory_space<vmem>>, vector<16x128xbf16>,
    %64 = arith.truncf %61 : vector<16x784xf32> to vector<16x784xbf16>
    %c0_48 = arith.constant 0 : index
    %c0_49 = arith.constant 0 : index
    %65 = vector.load %arg19[%c0_48, %c0_49] : memref<16x784xbf16, #tpu.memory_space<vmem>>, vector<16x784xbf16>
    tpu.vector_store %arg19[%c0_48, %c0_49], %64 {strides = array<i32>} : memref<16x784xbf16, #tpu.memory_space<vmem>>, vector<16x784xbf16>,
    return
  }
  func.func @transform_0(%arg0: i32) -> (i32, i32) {
    %c0_i32 = arith.constant 0 : i32
    %c0_i32_0 = arith.constant 0 : i32
    return %arg0, %c0_i32 : i32, i32
  }
  func.func @transform_1(%arg0: i32) -> (i32, i32) {
    %c0_i32 = arith.constant 0 : i32
    %c0_i32_0 = arith.constant 0 : i32
    %c0_i32_1 = arith.constant 0 : i32
    return %c0_i32, %c0_i32_0 : i32, i32
  }
  func.func @transform_2(%arg0: i32) -> (i32, i32) {
    %c0_i32 = arith.constant 0 : i32
    %c0_i32_0 = arith.constant 0 : i32
    %c0_i32_1 = arith.constant 0 : i32
    return %c0_i32, %c0_i32_0 : i32, i32
  }
  func.func @transform_3(%arg0: i32) -> (i32, i32) {
    %c0_i32 = arith.constant 0 : i32
    %c0_i32_0 = arith.constant 0 : i32
    %c0_i32_1 = arith.constant 0 : i32
    return %c0_i32, %c0_i32_0 : i32, i32
  }
  func.func @transform_4(%arg0: i32) -> (i32, i32) {
    %c0_i32 = arith.constant 0 : i32
    %c0_i32_0 = arith.constant 0 : i32
    %c0_i32_1 = arith.constant 0 : i32
    return %c0_i32, %c0_i32_0 : i32, i32
  }
  func.func @transform_5(%arg0: i32) -> (i32, i32) {
    %c0_i32 = arith.constant 0 : i32
    %c0_i32_0 = arith.constant 0 : i32
    %c0_i32_1 = arith.constant 0 : i32
    return %c0_i32, %c0_i32_0 : i32, i32
  }
  func.func @transform_6(%arg0: i32) -> (i32, i32) {
    %c0_i32 = arith.constant 0 : i32
    %c0_i32_0 = arith.constant 0 : i32
    %c0_i32_1 = arith.constant 0 : i32
    return %c0_i32, %c0_i32_0 : i32, i32
  }
  func.func @transform_7(%arg0: i32) -> (i32, i32) {
    %c0_i32 = arith.constant 0 : i32
    %c0_i32_0 = arith.constant 0 : i32
    %c0_i32_1 = arith.constant 0 : i32
    return %c0_i32, %c0_i32_0 : i32, i32
  }
  func.func @transform_8(%arg0: i32) -> (i32, i32) {
    %c0_i32 = arith.constant 0 : i32
    %c0_i32_0 = arith.constant 0 : i32
    %c0_i32_1 = arith.constant 0 : i32
    return %c0_i32, %c0_i32_0 : i32, i32
  }
  func.func @transform_9(%arg0: i32) -> (i32, i32) {
    %c0_i32 = arith.constant 0 : i32
    %c0_i32_0 = arith.constant 0 : i32
    %c0_i32_1 = arith.constant 0 : i32
    return %c0_i32, %c0_i32_0 : i32, i32
  }
  func.func @transform_10(%arg0: i32) -> (i32, i32) {
    %c0_i32 = arith.constant 0 : i32
    %c0_i32_0 = arith.constant 0 : i32
    %c0_i32_1 = arith.constant 0 : i32
    return %c0_i32, %c0_i32_0 : i32, i32
  }
  func.func @transform_11(%arg0: i32) -> (i32, i32) {
    %c0_i32 = arith.constant 0 : i32
    %c0_i32_0 = arith.constant 0 : i32
    %c0_i32_1 = arith.constant 0 : i32
    return %c0_i32, %c0_i32_0 : i32, i32
  }
  func.func @transform_12(%arg0: i32) -> (i32, i32) {
    %c0_i32 = arith.constant 0 : i32
    %c0_i32_0 = arith.constant 0 : i32
    %c0_i32_1 = arith.constant 0 : i32
    return %c0_i32, %c0_i32_0 : i32, i32
  }
  func.func @transform_13(%arg0: i32) -> (i32, i32) {
    %c0_i32 = arith.constant 0 : i32
    %c0_i32_0 = arith.constant 0 : i32
    %c0_i32_1 = arith.constant 0 : i32
    return %c0_i32, %c0_i32_0 : i32, i32
  }
  func.func @transform_14(%arg0: i32) -> (i32, i32) {
    %c0_i32 = arith.constant 0 : i32
    %c0_i32_0 = arith.constant 0 : i32
    %c0_i32_1 = arith.constant 0 : i32
    return %c0_i32, %c0_i32_0 : i32, i32
  }
  func.func @transform_15(%arg0: i32) -> (i32, i32) {
    %c0_i32 = arith.constant 0 : i32
    %c0_i32_0 = arith.constant 0 : i32
    %c0_i32_1 = arith.constant 0 : i32
    return %c0_i32, %c0_i32_0 : i32, i32
  }
  func.func @transform_16(%arg0: i32) -> (i32, i32) {
    %c0_i32 = arith.constant 0 : i32
    %c0_i32_0 = arith.constant 0 : i32
    %c0_i32_1 = arith.constant 0 : i32
    return %c0_i32, %c0_i32_0 : i32, i32
  }
  func.func @transform_17(%arg0: i32) -> (i32, i32) {
    %c0_i32 = arith.constant 0 : i32
    %c0_i32_0 = arith.constant 0 : i32
    return %arg0, %c0_i32 : i32, i32
  }
  func.func @transform_18(%arg0: i32) -> (i32, i32) {
    %c0_i32 = arith.constant 0 : i32
    %c0_i32_0 = arith.constant 0 : i32
    return %arg0, %c0_i32 : i32, i32
  }
}

</mosaic_0001>

<bundles_post_ra>
// kernel: tpu_custom_call.1
= control target key start
LH: loop header
LB: loop body
LE: loop exit
PB: predicated region body
PF: predicated region fallthrough
CT: control target
= control target key end

     0   :  { %s3091_s0 = inlined_call_operand.vmem [shape: f32[16,784], index: 0, kind: input, shape index: {}]   ;;  %s3092_s1 = inlined_call_operand.vmem [shape: bf16[784,128], index: 1, kind: input, shape index: {}]   ;;  %s3093_s2 = inlined_call_operand.vmem [shape: f32[1,128], index: 2, kind: input, shape index: {}]   ;;  %s3094_s3 = inlined_call_operand.vmem [shape: bf16[128,64], index: 3, kind: input, shape index: {}]   ;;  %s3095_s4 = inlined_call_operand.vmem [shape: f32[1,64], index: 4, kind: input, shape index: {}]   ;;  %s3096_s5 = inlined_call_operand.vmem [shape: bf16[64,12], index: 5, kind: input, shape index: {}]   ;;  %s3097_s6 = inlined_call_operand.vmem [shape: f32[1,12], index: 6, kind: input, shape index: {}]   ;;  %s3098_s7 = inlined_call_operand.vmem [shape: bf16[12,128], index: 7, kind: input, shape index: {}]   ;;  %s3099_s8 = inlined_call_operand.vmem [shape: f32[1,128], index: 8, kind: input, shape index: {}]   ;;  %s3100_s9 = inlined_call_operand.vmem [shape: bf16[128,12], index: 9, kind: input, shape index: {}]   ;;  %s3101_s10 = inlined_call_operand.vmem [shape: f32[1,12], index: 10, kind: input, shape index: {}]   ;;  %s3102_s11 = inlined_call_operand.vmem [shape: bf16[12,64], index: 11, kind: input, shape index: {}]   ;;  %s3103_s12 = inlined_call_operand.vmem [shape: f32[1,64], index: 12, kind: input, shape index: {}]   ;;  %s3104_s13 = inlined_call_operand.vmem [shape: bf16[64,128], index: 13, kind: input, shape index: {}]   ;;  %s3105_s14 = inlined_call_operand.vmem [shape: f32[1,128], index: 14, kind: input, shape index: {}]   ;;  %s3106_s15 = inlined_call_operand.vmem [shape: bf16[128,784], index: 15, kind: input, shape index: {}]   ;;  %s3107_s16 = inlined_call_operand.vmem [shape: f32[1,784], index: 16, kind: input, shape index: {}]   ;;  %s3108_s17 = inlined_call_operand.hbm [shape: bf16[16,128], index: 17, kind: output, shape index: {0}]   ;;  %s3109_s18 = inlined_call_operand.hbm [shape: bf16[16,784], index: 18, kind: output, shape index: {1}]  }
   0x1   :  { %3112 = sst [smem:[#allocation8_spill]] %s3091_s0 }
   0x2   :  { %3113 = sst [smem:[#allocation9_spill]] %s3092_s1 }
   0x3   :  { %3114 = sst [smem:[#allocation10_spill]] %s3093_s2 }
   0x4   :  { %24 = vsyncpa [#allocation3], 0  ;;  %s3115_s29 = sld [smem:[#allocation9_spill]]  ;;  %v2465_v43 = vmov 0.0   ;;  %vm2466_vm0 = vmmov 0   ;;  %vm481_vm1 = vcmask 130048  }
   0x5   :  { %s3116_s22 = sld [smem:[#allocation8_spill]] }
   0xa   :  { %v2238_v0 = vld [vmem:[%s3115_s29 + $0x78] sm:$0xff]   ;;  %v2242_v4 = vld [vmem:[%s3115_s29 + $0x70] sm:$0xff]   ;;  %v2246_v8 = vld [vmem:[%s3115_s29 + $0x68] sm:$0xff]  }
   0xb   :  { %v2239_v1 = vld [vmem:[%s3115_s29 + $0x38] sm:$0xff]   ;;  %2018 = vmatprep.subr.bf16.mxu0 %v2238_v0  ;;  %v2243_v5 = vld [vmem:[%s3115_s29 + $0x30] sm:$0xff]   ;;  %v2247_v9 = vld [vmem:[%s3115_s29 + $0x28] sm:$0xff]  }
   0xc   :  { %v2240_v2 = vld [vmem:[%s3115_s29 + $0xf8] sm:$0xff]   ;;  %2019 = vmatpush3.bf16.msra.mxu0 %v2239_v1  ;;  %v2244_v6 = vld [vmem:[%s3115_s29 + $0xf0] sm:$0xff]   ;;  %v2248_v10 = vld [vmem:[%s3115_s29 + $0xe8] sm:$0xff]  }
   0xd   :  { %v2241_v3 = vld [vmem:[%s3115_s29 + $0xb8] sm:$0xff]   ;;  %2040 = vmatprep.subr.bf16.mxu1 %v2240_v2  ;;  %2020 = vmatprep.subr.bf16.mxu0 %v2242_v4  ;;  %v2245_v7 = vld [vmem:[%s3115_s29 + $0xb0] sm:$0xff]   ;;  %v2249_v11 = vld [vmem:[%s3115_s29 + $0xa8] sm:$0xff]  }
   0xe   :  { %2041 = vmatpush3.bf16.msra.mxu1 %v2241_v3  ;;  %v2250_v12 = vld [vmem:[%s3115_s29 + $0x60] sm:$0xff]   ;;  %v2254_v16 = vld [vmem:[%s3115_s29 + $0x58] sm:$0xff]   ;;  %v2258_v20 = vld [vmem:[%s3115_s29 + $0x50] sm:$0xff]  }
   0xf   :  { %2042 = vmatprep.subr.bf16.mxu1 %v2244_v6  ;;  %v2251_v13 = vld [vmem:[%s3115_s29 + $0x20] sm:$0xff]   ;;  %v2255_v17 = vld [vmem:[%s3115_s29 + $0x18] sm:$0xff]   ;;  %v2259_v21 = vld [vmem:[%s3115_s29 + $0x10] sm:$0xff]  }
  0x10   :  { %2021 = vmatpush3.bf16.msra.mxu0 %v2243_v5  ;;  %v2252_v14 = vld [vmem:[%s3115_s29 + $0xe0] sm:$0xff]   ;;  %v2256_v18 = vld [vmem:[%s3115_s29 + $0xd8] sm:$0xff]   ;;  %v2260_v22 = vld [vmem:[%s3115_s29 + $0xd0] sm:$0xff]  }
  0x11   :  { %2022 = vmatprep.subr.bf16.mxu0 %v2246_v8  ;;  %v2253_v15 = vld [vmem:[%s3115_s29 + $0xa0] sm:$0xff]   ;;  %v2257_v19 = vld [vmem:[%s3115_s29 + $0x98] sm:$0xff]   ;;  %v2261_v23 = vld [vmem:[%s3115_s29 + $0x90] sm:$0xff]  }
  0x12   :  { %2043 = vmatpush3.bf16.msra.mxu1 %v2245_v7  ;;  %v2262_v24 = vld [vmem:[%s3115_s29 + $0x48] sm:$0xff]   ;;  %v2266_v28 = vld [vmem:[%s3115_s29 + $0x40] sm:$0xff]   ;;  %v68_v36 = vld [vmem:[%s3116_s22 + $0x38] sm:$0xff] }
  0x13   :  { %2044 = vmatprep.subr.bf16.mxu1 %v2248_v10  ;;  %v2263_v25 = vld [vmem:[%s3115_s29 + $0x8] sm:$0xff]   ;;  %v2267_v29 = vld [vmem:[%s3115_s29] sm:$0xff]   ;;  %v2270_v38 = vld [vmem:[%s3115_s29 + $0x178] sm:$0xff]  }
  0x14   :  { %2023 = vmatpush3.bf16.msra.mxu0 %v2247_v9  ;;  %v2264_v26 = vld [vmem:[%s3115_s29 + $0xc8] sm:$0xff]   ;;  %v2268_v30 = vld [vmem:[%s3115_s29 + $0xc0] sm:$0xff]   ;;  %v64_v39 = vld [vmem:[%s3116_s22 + $0x18] sm:$0xff] }
  0x15   :  { %2024 = vmatprep.subr.bf16.mxu0 %v2250_v12  ;;  %v2265_v27 = vld [vmem:[%s3115_s29 + $0x88] sm:$0xff]   ;;  %v69_v32 = vld [vmem:[%s3116_s22 + $0x40] sm:$0xff]  ;;  %v71_v40 = vld [vmem:[%s3116_s22 + $0x50] sm:$0xff] }
  0x16   :  { %2045 = vmatpush3.bf16.msra.mxu1 %v2249_v11  ;;  %v62_v31 = vld [vmem:[%s3116_s22 + $0x8] sm:$0xff]  ;;  %v2269_v34 = vld [vmem:[%s3115_s29 + $0x80] sm:$0xff]   ;;  %v78_v41 = vpack.c.bf16 %v71_v40, %v64_v39  ;;  %v2271_v42 = vld [vmem:[%s3115_s29 + $0x138] sm:$0xff]  }
  0x17   :  { %2046 = vmatprep.subr.bf16.mxu1 %v2252_v14  ;;  %v76_v33 = vpack.c.bf16 %v69_v32, %v62_v31  ;;  %v61_v35 = vld [vmem:[%s3116_s22] sm:$0xff]  ;;  %v63_v44 = vld [vmem:[%s3116_s22 + $0x10] sm:$0xff]  ;;  %v70_v45 = vld [vmem:[%s3116_s22 + $0x48] sm:$0xff] }
  0x18   :  { %2025 = vmatpush3.bf16.msra.mxu0 %v2251_v13  ;;  %v75_v37 = vpack.c.bf16 %v68_v36, %v61_v35  ;;  %558 = vmatprep.mubr.bf16.mxu1 %v78_v41  ;;  %v77_v46 = vpack.c.bf16 %v70_v45, %v63_v44  ;;  %v2272_v47 = vld [vmem:[%s3115_s29 + $0x170] sm:$0xff]   ;;  %v2274_v49 = vld [vmem:[%s3115_s29 + $0x168] sm:$0xff]   ;;  %v2276_v51 = vld [vmem:[%s3115_s29 + $0x160] sm:$0xff]  }
  0x19   :  { %2026 = vmatprep.subr.bf16.mxu0 %v2254_v16  ;;  %517 = vmatprep.mubr.bf16.mxu0 %v76_v33  ;;  %v2273_v48 = vld [vmem:[%s3115_s29 + $0x130] sm:$0xff]   ;;  %v2275_v50 = vld [vmem:[%s3115_s29 + $0x128] sm:$0xff]   ;;  %v2277_v52 = vld [vmem:[%s3115_s29 + $0x120] sm:$0xff]  }
  0x1a   :  { %2047 = vmatpush3.bf16.msra.mxu1 %v2253_v15  ;;  %v2278_v53 = vld [vmem:[%s3115_s29 + $0x158] sm:$0xff]   ;;  %v2280_v55 = vld [vmem:[%s3115_s29 + $0x150] sm:$0xff]   ;;  %v2286_v56 = vld [vmem:[%s3115_s29 + $0x180] sm:$0xff]  }
  0x1b   :  { %2048 = vmatprep.subr.bf16.mxu1 %v2256_v18  ;;  %v2279_v54 = vld [vmem:[%s3115_s29 + $0x118] sm:$0xff]   ;;  %v66_v57 = vld [vmem:[%s3116_s22 + $0x28] sm:$0xff]  ;;  %v2281_v58 = vld [vmem:[%s3115_s29 + $0x110] sm:$0xff]  }
  0x1c   :  { %2027 = vmatpush3.bf16.msra.mxu0 %v2255_v17  ;;  %v2282_v59 = vld [vmem:[%s3115_s29 + $0x148] sm:$0xff]   ;;  %v73_v60 = vld [vmem:[%s3116_s22 + $0x60] sm:$0xff]  ;;  %v67_v62 = vld [vmem:[%s3116_s22 + $0x30] sm:$0xff] }
  0x1d   :  { %2028 = vmatprep.subr.bf16.mxu0 %v2258_v20  ;;  %v80_v61 = vpack.c.bf16 %v73_v60, %v66_v57  ;;  %v74_v63 = vld [vmem:[%s3116_s22 + $0x68] sm:$0xff]  ;;  %v2284_v2 = vld [vmem:[%s3115_s29 + $0x140] sm:$0xff]   ;;  %v72_v5 = vld [vmem:[%s3116_s22 + $0x58] sm:$0xff] }
  0x1e   :  { %2049 = vmatpush3.bf16.msra.mxu1 %v2257_v19  ;;  %v81_v0 = vpack.c.bf16 %v74_v63, %v67_v62  ;;  %v2283_v1 = vld [vmem:[%s3115_s29 + $0x108] sm:$0xff]   ;;  %v2285_v3 = vld [vmem:[%s3115_s29 + $0x100] sm:$0xff]  }
  0x1f   :  { %2050 = vmatprep.subr.bf16.mxu1 %v2260_v22  ;;  %v65_v4 = vld [vmem:[%s3116_s22 + $0x20] sm:$0xff] }
  0x20   :  { %2029 = vmatpush3.bf16.msra.mxu0 %v2259_v21  ;;  %v79_v6 = vpack.c.bf16 %v72_v5, %v65_v4 }
  0x21   :  { %2030 = vmatprep.subr.bf16.mxu0 %v2262_v24 }
  0x22   :  { %2051 = vmatpush3.bf16.msra.mxu1 %v2261_v23 }
  0x23   :  { %2052 = vmatprep.subr.bf16.mxu1 %v2264_v26 }
  0x24   :  { %2031 = vmatpush3.bf16.msra.mxu0 %v2263_v25 }
  0x25   :  { %2032 = vmatprep.subr.bf16.mxu0 %v2266_v28 }
  0x26   :  { %2053 = vmatpush3.bf16.msra.mxu1 %v2265_v27 }
  0x27   :  { %2054 = vmatprep.subr.bf16.mxu1 %v2268_v30 }
  0x28   :  { %2033 = vmatpush3.bf16.msra.mxu0 %v2267_v29 }
  0x29   :  { %2062 = vmatprep.subr.bf16.mxu0 %v2270_v38 }
  0x2a   :  { %2055 = vmatpush3.bf16.msra.mxu1 %v2269_v34 }
  0x2b   :  { %2127 = vmatprep.subr.bf16.mxu1 %v2465_v43  ;;  %518 = vmatmul.mubr.bf16.vlgmr.msra.gmra.mxu0 %v75_v37 }
  0x2c   :  { %2063 = vmatpush3.bf16.msra.mxu0 %v2271_v42  ;;  %599 = vmatprep.mubr.bf16.mxu0 %v80_v61 }
  0x2d   :  { %559 = vmatmul.mubr.bf16.vlgmr.msra.gmra.mxu1 %v77_v46  ;;  %2064 = vmatprep.subr.bf16.mxu0 %v2272_v47 }
  0x2e   :  { %2129 = vmatprep.mubr.msk.bf16.mxu1 %vm2466_vm0, %v2465_v43  ;;  %2128 = vmatpush3.bf16.msra.mxu1 %v2286_v56 }
  0x2f   :  { %2133 = vmatprep.subr.bf16.mxu1 %v2465_v43 }
  0x30   :  { %2065 = vmatpush3.bf16.msra.mxu0 %v2273_v48 }
  0x31   :  { %2066 = vmatprep.subr.bf16.mxu0 %v2274_v49 }
  0x34   :  { %2067 = vmatpush3.bf16.msra.mxu0 %v2275_v50 }
  0x35   :  { %2068 = vmatprep.subr.bf16.mxu0 %v2276_v51  ;;  %2130 = vmatmul.mubr.msk.bf16.vlgmr.msra.gmra.mxu1 %vm481_vm1, %v81_v0 }
  0x36   :  { %2149 = vmatprep.mubr.msk.bf16.mxu1 %vm2466_vm0, %v2465_v43 }
  0x38   :  { %2069 = vmatpush3.bf16.msra.mxu0 %v2277_v52 }
  0x39   :  { %2070 = vmatprep.subr.bf16.mxu0 %v2278_v53 }
  0x3c   :  { %2071 = vmatpush3.bf16.msra.mxu0 %v2279_v54 }
  0x3d   :  { %2072 = vmatprep.subr.bf16.mxu0 %v2280_v55 }
  0x40   :  { %2073 = vmatpush3.bf16.msra.mxu0 %v2281_v58 }
  0x41   :  { %2074 = vmatprep.subr.bf16.mxu0 %v2282_v59 }
  0x44   :  { %2075 = vmatpush3.bf16.msra.mxu0 %v2283_v1 }
  0x45   :  { %2076 = vmatprep.subr.bf16.mxu0 %v2284_v2 }
  0x48   :  { %2077 = vmatpush3.bf16.msra.mxu0 %v2285_v3 }
  0x49   :  { %2153 = vmatprep.subr.bf16.mxu0 %v2465_v43 }
  0x4b   :  { %600 = vmatmul.mubr.bf16.vlgmr.msra.gmra.mxu0 %v79_v6 }
  0x4c   :  { %2161 = vmatprep.mubr.msk.bf16.mxu0 %vm2466_vm0, %v2465_v43 }
  0x4d   :  { %25 = vsyncpa [#allocation5], 0  ;;  %v2287_v7 = vld [vmem:[%s3094_s3 + $0x38] sm:$0xff]   ;;  %v2288_v8 = vld [vmem:[%s3094_s3 + $0x30] sm:$0xff]   ;;  %s3117_s22 = sld [smem:[#allocation10_spill]]  ;;  %vm806_vm2 = vcmask 523264  }
  0x4e   :  { %2134 = vmatpush3.bf16.msra.mxu1 %v2287_v7  ;;  %v2289_v9 = vld [vmem:[%s3094_s3 + $0x28] sm:$0xff]   ;;  %v2290_v10 = vld [vmem:[%s3094_s3 + $0x20] sm:$0xff]   ;;  %v2291_v11 = vld [vmem:[%s3094_s3 + $0x18] sm:$0xff]   ;;  %vm872_vm3 = vcmask 1045504   ;;  %vm868_vm4 = vcmask 97280   ;;  %s2468_s30 = smov [#allocation2]  }
  0x4f   :  { %2135 = vmatprep.subr.bf16.mxu1 %v2465_v43  ;;  %v2292_v12 = vld [vmem:[%s3094_s3 + $0x10] sm:$0xff]   ;;  %v2293_v13 = vld [vmem:[%s3094_s3 + $0x8] sm:$0xff]   ;;  %v2294_v14 = vld [vmem:[%s3094_s3] sm:$0xff]  }
  0x50   :  { %v2295_v15 = vld [vmem:[%s3096_s5 + $0x18] sm:$0xff]   ;;  %v2296_v51 = vld [vmem:[%s3096_s5 + $0x10] sm:$0xff]   ;;  %v2297_v52 = vld [vmem:[%s3096_s5 + $0x8] sm:$0xff]  }
  0x51   :  { %2154 = vmatpush3.bf16.msra.mxu0 %v2295_v15  ;;  %v2298_v53 = vld [vmem:[%s3096_s5] sm:$0xff]   ;;  %v2300_v2 = vld [vmem:[%s3100_s9 + $0x38] sm:$0xff]   ;;  %v2301_v3 = vld [vmem:[%s3100_s9 + $0x30] sm:$0xff]   ;;  %s1823_s5 = sshll.u32 %s2468_s30, 4  ;;  %s1824_s5 = int_to_ptr.vmem [resolvable:$true] %s1823_s5 }
  0x52   :  { %2136 = vmatpush3.bf16.msra.mxu1 %v2288_v8  ;;  %2155 = vmatprep.subr.bf16.mxu0 %v2465_v43  ;;  %v1901_v54 = vld [vmem:[%s3095_s4] ss:$0 sm:$0xff]  ;;  %v2302_v4 = vld [vmem:[%s3100_s9 + $0x28] sm:$0xff]   ;;  %v2304_v6 = vld [vmem:[%s3100_s9 + $0x18] sm:$0xff]   ;;  %s2421_s0 = scalar_lea.vmem %s1824_s5, 128  ;;  %p2426_p1 = scmp.lt.s32.totalorder %s1824_s5, %s1824_s5 }
  0x53   :  { %2137 = vmatprep.subr.bf16.mxu1 %v2465_v43  ;;  %v1850_v28 = vld [vmem:[%s3117_s22] ss:$0 sm:$0xff]  ;;  %v2305_v7 = vld [vmem:[%s3100_s9 + $0x10] sm:$0xff]   ;;  %p2422_p0 = scmp.ne.s32.totalorder %s1824_s5, %s2421_s0  ;;  %p2427_p2 = scmp.lt.s32.totalorder %s2421_s0, %s2421_s0 }
  0x54   :  { %v2299_v0 = vld [vmem:[%s3098_s7] sm:$0x3f]  }
  0x55   :  { %2156 = vmatpush3.bf16.msra.mxu0 %v2296_v51  ;;  %v874_v1 = vsel %vm872_vm3, %v2299_v0, 0  ;;  %v2303_v5 = vld [vmem:[%s3100_s9 + $0x20] sm:$0xff]   ;;  %p2428_p3 = por %p2427_p2, %p2426_p1 }
  0x56   :  { %2138 = vmatpush3.bf16.msra.mxu1 %v2289_v9  ;;  %2157 = vmatprep.subr.bf16.mxu0 %v2465_v43  ;;  %v1910_v8 = vld [vmem:[%s3097_s6] ss:$0 sm:$0xff] }
  0x57   :  { %2139 = vmatprep.subr.bf16.mxu1 %v2465_v43  ;;  %v2328_v51 = vld [vmem:[%s3106_s15 + $0x120] ss:$28 sps:$4 sm:$0xff]   ;;  %p2429_p4 = pnand %p2428_p3, %p2422_p0 }
  0x59   :  { %2158 = vmatpush3.bf16.msra.mxu0 %v2297_v52  ;;  %v2336_v52 = vld [vmem:[%s3106_s15 + $0xec] ss:$28 sps:$4 sm:$0xff]  }
  0x5a   :  { %2140 = vmatpush3.bf16.msra.mxu1 %v2290_v10  ;;  %2159 = vmatprep.subr.bf16.mxu0 %v2465_v43 }
  0x5b   :  { %2141 = vmatprep.subr.bf16.mxu1 %v2465_v43 }
  0x5d   :  { %2160 = vmatpush3.bf16.msra.mxu0 %v2298_v53  ;;  %v2334_v53 = vld [vmem:[%s3106_s15 + $0xe8] ss:$28 sps:$4 sm:$0xff]  }
  0x5e   :  { %2142 = vmatpush3.bf16.msra.mxu1 %v2291_v11  ;;  %2171 = vmatprep.subr.bf16.mxu0 %v2465_v43 }
  0x5f   :  { %2143 = vmatprep.subr.bf16.mxu1 %v2465_v43 }
  0x62   :  { %2144 = vmatpush3.bf16.msra.mxu1 %v2292_v12 }
  0x63   :  { %2145 = vmatprep.subr.bf16.mxu1 %v2465_v43 }
  0x66   :  { %2146 = vmatpush3.bf16.msra.mxu1 %v2293_v13 }
  0x67   :  { %2147 = vmatprep.subr.bf16.mxu1 %v2465_v43 }
  0x6a   :  { %2148 = vmatpush3.bf16.msra.mxu1 %v2294_v14 }
  0x6b   :  { %2165 = vmatprep.subr.bf16.mxu1 %v2465_v43 }
  0xeb   :  { %v2034_v19 = vpop.f32.mrf.mxu0 }
  0xed   :  { %v2056_v16 = vpop.f32.mrf.mxu1  ;;  %v2035_v21 = vpop.f32.mrf.mxu0 }
  0xee   :  { %v2036_v27 = vadd.f32 %v2035_v21, %v2034_v19  ;;  %v2307_v19 = vld [vmem:[%s3100_s9] sm:$0xff]  }
  0xef   :  { %v2057_v17 = vpop.f32.mrf.mxu1  ;;  %v2037_v24 = vpop.f32.mrf.mxu0  ;;  %v1916_v21 = vld [vmem:[%s3099_s8] ss:$0 sm:$0xff] }
  0xf0   :  { %v520_v30 = vadd.f32 %v2036_v27, %v1850_v28  ;;  %v2058_v31 = vadd.f32 %v2057_v17, %v2056_v16 }
  0xf1   :  { %v2059_v18 = vpop.f32.mrf.mxu1  ;;  %v2038_v29 = vpop.f32.mrf.mxu0 }
  0xf2   :  { %v2039_v32 = vadd.f32 %v2038_v29, %v2037_v24  ;;  %v561_v35 = vadd.f32 %v2058_v31, %v520_v30  ;;  %v1919_v30 = vld [vmem:[%s3101_s10] ss:$0 sm:$0xff] }
  0xf3   :  { %v2060_v20 = vpop.f32.mrf.mxu1 }
  0xf4   :  { %v523_v36 = vadd.f32 %v2039_v32, %v1850_v28  ;;  %v2061_v37 = vadd.f32 %v2060_v20, %v2059_v18  ;;  %v2306_v18 = vld [vmem:[%s3100_s9 + $0x8] sm:$0xff]   ;;  %v2308_v28 = vld [vmem:[%s3102_s11] sm:$0x3f]  }
  0xf5   :  { %v642_v22 = vpop.f32.mrf.mxu1  ;;  %v1051_v29 = vsel %vm872_vm3, %v2308_v28, 0 }
  0xf6   :  { %v564_v42 = vadd.f32 %v2061_v37, %v523_v36 }
  0xf7   :  { %v2131_v23 = vpop.f32.mrf.mxu1 }
  0xf9   :  { %v645_v25 = vpop.f32.mrf.mxu1 }
  0xfb   :  { %v2132_v26 = vpop.f32.mrf.mxu1 }
 0x10b   :  { %v2078_v33 = vpop.f32.mrf.mxu0 }
 0x10d   :  { %v2079_v34 = vpop.f32.mrf.mxu0 }
 0x10e   :  { %v2080_v38 = vadd.f32 %v2079_v34, %v2078_v33 }
 0x10f   :  { %v2081_v39 = vpop.f32.mrf.mxu0 }
 0x110   :  { %v602_v40 = vadd.f32 %v2080_v38, %v561_v35 }
 0x111   :  { %v2082_v41 = vpop.f32.mrf.mxu0 }
 0x112   :  { %v2083_v44 = vadd.f32 %v2082_v41, %v2081_v39  ;;  %v643_v45 = vadd.f32 %v642_v22, %v602_v40  ;;  %v2309_v39 = vld [vmem:[%s3104_s13 + $0x18] sm:$0xff]   ;;  %v2310_v41 = vld [vmem:[%s3104_s13 + $0x10] sm:$0xff]  }
 0x114   :  { %v605_v46 = vadd.f32 %v2083_v44, %v564_v42  ;;  %v649_v48 = vmax.f32 %v643_v45, 0.0  ;;  %v2311_v42 = vld [vmem:[%s3104_s13 + $0x8] sm:$0xff]   ;;  %v2312_v44 = vld [vmem:[%s3104_s13] sm:$0xff]  }
 0x115   :  { %v2315_v45 = vld [vmem:[%s3106_s15 + $0x18c] ss:$28 sps:$4 sm:$0xff]  }
 0x116   :  { %v646_v47 = vadd.f32 %v645_v25, %v605_v46  ;;  %v2316_v46 = vld [vmem:[%s3106_s15 + $0x190] ss:$28 sps:$4 sm:$0xff]  }
 0x118   :  { %v650_v49 = vmax.f32 %v646_v47, 0.0  ;;  %v2318_v47 = vld [vmem:[%s3106_s15 + $0x194] ss:$28 sps:$4 sm:$0xff]  }
 0x11a   :  { %v651_v50 = vpack.c.bf16 %v650_v49, %v649_v48  ;;  %v2324_v48 = vld [vmem:[%s3106_s15 + $0x15c] ss:$28 sps:$4 sm:$0xff]  }
 0x11b   :  { %v2322_v49 = vld [vmem:[%s3106_s15 + $0x158] ss:$28 sps:$4 sm:$0xff]  }
 0x11c   :  { %2150 = vmatmul.mubr.bf16.vlgmr.msra.gmra.mxu1 %v651_v50  ;;  %v2330_v50 = vld [vmem:[%s3106_s15 + $0x124] ss:$28 sps:$4 sm:$0xff]  }
 0x11d   :  { %2167 = vmatprep.mubr.msk.bf16.mxu1 %vm2466_vm0, %v2465_v43  ;;  %2166 = vmatpush3.bf16.msra.mxu1 %v874_v1 }
 0x11e   :  { %2191 = vmatprep.subr.bf16.mxu1 %v2465_v43 }
 0x1dc   :  { %v757_v55 = vpop.f32.mrf.mxu1 }
 0x1dd   :  { %v758_v57 = vadd.f32 %v1901_v54, %v757_v55  ;;  %v2340_v55 = vld [vmem:[%s3106_s15 + $0xb0] ss:$28 sps:$4 sm:$0xff]  }
 0x1de   :  { %v2151_v56 = vpop.f32.mrf.mxu1 }
 0x1df   :  { %v764_v61 = vmax.f32 %v758_v57, 0.0  ;;  %v2348_v56 = vld [vmem:[%s3106_s15 + $0x7c] ss:$28 sps:$4 sm:$0xff]  }
 0x1e0   :  { %v760_v58 = vpop.f32.mrf.mxu1  ;;  %v2346_v57 = vld [vmem:[%s3106_s15 + $0x78] ss:$28 sps:$4 sm:$0xff]  }
 0x1e1   :  { %v761_v59 = vadd.f32 %v1901_v54, %v760_v58  ;;  %v2342_v54 = vld [vmem:[%s3106_s15 + $0xb4] ss:$28 sps:$4 sm:$0xff]   ;;  %v1928_v58 = vld [vmem:[%s3103_s12] ss:$0 sm:$0xff] }
 0x1e2   :  { %v2152_v60 = vpop.f32.mrf.mxu1 }
 0x1e3   :  { %v765_v62 = vmax.f32 %v761_v59, 0.0 }
 0x1e5   :  { %v766_v63 = vpack.c.bf16 %v765_v62, %v764_v61 }
 0x1e7   :  { %2162 = vmatmul.mubr.msk.bf16.vlgmr.msra.gmra.mxu0 %vm806_vm2, %v766_v63 }
 0x1e8   :  { %2187 = vmatprep.mubr.msk.bf16.mxu0 %vm2466_vm0, %v2465_v43  ;;  %2172 = vmatpush3.bf16.msra.mxu0 %v2300_v2 }
 0x1e9   :  { %2173 = vmatprep.subr.bf16.mxu0 %v2465_v43 }
 0x1ec   :  { %2174 = vmatpush3.bf16.msra.mxu0 %v2301_v3  ;;  %v2313_v3 = vld [vmem:[%s3106_s15 + $0x188] ss:$28 sps:$4 sm:$0xff]  }
 0x1ed   :  { %2175 = vmatprep.subr.bf16.mxu0 %v2465_v43 }
 0x1f0   :  { %2176 = vmatpush3.bf16.msra.mxu0 %v2302_v4 }
 0x1f1   :  { %2177 = vmatprep.subr.bf16.mxu0 %v2465_v43 }
 0x1f4   :  { %2178 = vmatpush3.bf16.msra.mxu0 %v2303_v5  ;;  %v2321_v5 = vld [vmem:[%s3106_s15 + $0x154] ss:$28 sps:$4 sm:$0xff]  }
 0x1f5   :  { %2179 = vmatprep.subr.bf16.mxu0 %v2465_v43 }
 0x1f8   :  { %2180 = vmatpush3.bf16.msra.mxu0 %v2304_v6  ;;  %v2319_v6 = vld [vmem:[%s3106_s15 + $0x150] ss:$28 sps:$4 sm:$0xff]  }
 0x1f9   :  { %2181 = vmatprep.subr.bf16.mxu0 %v2465_v43 }
 0x1fc   :  { %2182 = vmatpush3.bf16.msra.mxu0 %v2305_v7  ;;  %v2327_v7 = vld [vmem:[%s3106_s15 + $0x11c] ss:$28 sps:$4 sm:$0xff]  }
 0x1fd   :  { %2183 = vmatprep.subr.bf16.mxu0 %v2465_v43 }
 0x200   :  { %2184 = vmatpush3.bf16.msra.mxu0 %v2306_v18  ;;  %v2352_v18 = vld [vmem:[%s3106_s15 + $0x40] ss:$28 sps:$4 sm:$0xff]  }
 0x201   :  { %2185 = vmatprep.subr.bf16.mxu0 %v2465_v43 }
 0x204   :  { %2186 = vmatpush3.bf16.msra.mxu0 %v2307_v19  ;;  %v2357_v19 = vld [vmem:[%s3106_s15 + $0x4] ss:$28 sps:$4 sm:$0xff]  }
 0x205   :  { %1615 = vmatprep.subr.bf16.mxu0 %v2318_v47  ;;  %v2379_v47 = vld [vmem:[%s3106_s15 + $0xbc] ss:$28 sps:$4 sm:$0xff]  }
 0x2a7   :  { %v844_v9 = vpop.f32.mrf.mxu0 }
 0x2a8   :  { %v845_v11 = vadd.f32 %v1910_v8, %v844_v9  ;;  %v2333_v9 = vld [vmem:[%s3106_s15 + $0xe4] ss:$28 sps:$4 sm:$0xff]  }
 0x2a9   :  { %v2163_v10 = vpop.f32.mrf.mxu0 }
 0x2aa   :  { %v851_v15 = vmax.f32 %v845_v11, 0.0  ;;  %v2331_v10 = vld [vmem:[%s3106_s15 + $0xe0] ss:$28 sps:$4 sm:$0xff]   ;;  %v2339_v11 = vld [vmem:[%s3106_s15 + $0xac] ss:$28 sps:$4 sm:$0xff]  }
 0x2ab   :  { %v847_v12 = vpop.f32.mrf.mxu0 }
 0x2ac   :  { %v848_v13 = vadd.f32 %v1910_v8, %v847_v12  ;;  %v2325_v8 = vld [vmem:[%s3106_s15 + $0x118] ss:$28 sps:$4 sm:$0xff]   ;;  %v2337_v12 = vld [vmem:[%s3106_s15 + $0xa8] ss:$28 sps:$4 sm:$0xff]  }
 0x2ad   :  { %v2164_v14 = vpop.f32.mrf.mxu0 }
 0x2ae   :  { %v852_v16 = vmax.f32 %v848_v13, 0.0  ;;  %v2345_v13 = vld [vmem:[%s3106_s15 + $0x74] ss:$28 sps:$4 sm:$0xff]  }
 0x2af   :  { %v2343_v14 = vld [vmem:[%s3106_s15 + $0x70] ss:$28 sps:$4 sm:$0xff]  }
 0x2b0   :  { %v853_v17 = vpack.c.bf16 %v852_v16, %v851_v15  ;;  %v2351_v15 = vld [vmem:[%s3106_s15 + $0x3c] ss:$28 sps:$4 sm:$0xff]   ;;  %v2354_v16 = vld [vmem:[%s3106_s15 + $0x44] ss:$28 sps:$4 sm:$0xff]  }
 0x2b2   :  { %2168 = vmatmul.mubr.msk.bf16.vlgmr.msra.gmra.mxu1 %vm868_vm4, %v853_v17  ;;  %v2349_v17 = vld [vmem:[%s3106_s15 + $0x38] ss:$28 sps:$4 sm:$0xff]  }
 0x2b3   :  { %2193 = vmatprep.mubr.msk.bf16.mxu1 %vm2466_vm0, %v2465_v43  ;;  %2192 = vmatpush3.bf16.msra.mxu1 %v1051_v29 }
 0x2b4   :  { %2197 = vmatprep.subr.bf16.mxu1 %v2465_v43 }
 0x372   :  { %v910_v20 = vpop.f32.mrf.mxu1 }
 0x373   :  { %v911_v24 = vadd.f32 %v1916_v21, %v910_v20  ;;  %v2360_v20 = vld [vmem:[%s3106_s15 + $0xc] ss:$28 sps:$4 sm:$0xff]  }
 0x374   :  { %v2169_v22 = vpop.f32.mrf.mxu1 }
 0x375   :  { %v2358_v22 = vld [vmem:[%s3106_s15 + $0x8] ss:$28 sps:$4 sm:$0xff]  }
 0x376   :  { %v913_v23 = vpop.f32.mrf.mxu1 }
 0x377   :  { %v914_v25 = vadd.f32 %v1916_v21, %v913_v23  ;;  %v2355_v21 = vld [vmem:[%s3106_s15] ss:$28 sps:$4 sm:$0xff]  }
 0x378   :  { %v2170_v26 = vpop.f32.mrf.mxu1  ;;  %v2363_v23 = vld [vmem:[%s3106_s15 + $0x19c] ss:$28 sps:$4 sm:$0xff]  }
 0x379   :  { %v917_v27 = vpack.c.bf16 %v914_v25, %v911_v24  ;;  %v2467_v24 = vmov 0   ;;  %v1931_v25 = vld [vmem:[%s3105_s14] ss:$0 sm:$0xff] }
 0x37b   :  { %2017 = vst [vmem:[#allocation2] sm:$0xff] %v917_v27   ;;  %2188 = vmatmul.mubr.bf16.vlgmr.msra.gmra.mxu0 %v917_v27 }
 0x37c   :  { %1616 = vmatpush1.bf16.msra.mxu0 %v2316_v46  ;;  %1647 = vmatprep.mubr.bf16.mxu0 %v2467_v24  ;;  %v2376_v46 = vld [vmem:[%s3106_s15 + $0xf8] ss:$28 sps:$4 sm:$0xff]  }
 0x37d   :  { %1617 = vmatprep.subr.bf16.mxu0 %v2324_v48  ;;  %v2377_v48 = vld [vmem:[%s3106_s15 + $0xb8] ss:$28 sps:$4 sm:$0xff]  }
 0x380   :  { %1618 = vmatpush1.bf16.msra.mxu0 %v2322_v49  ;;  %v2380_v49 = vld [vmem:[%s3106_s15 + $0xc0] ss:$28 sps:$4 sm:$0xff]  }
 0x381   :  { %1619 = vmatprep.subr.bf16.mxu0 %v2330_v50  ;;  %v2383_v50 = vld [vmem:[%s3106_s15 + $0x84] ss:$28 sps:$4 sm:$0xff]  }
 0x384   :  { %1620 = vmatpush1.bf16.msra.mxu0 %v2328_v51  ;;  %v2381_v51 = vld [vmem:[%s3106_s15 + $0x80] ss:$28 sps:$4 sm:$0xff]  }
 0x385   :  { %1621 = vmatprep.subr.bf16.mxu0 %v2336_v52  ;;  %v2384_v52 = vld [vmem:[%s3106_s15 + $0x88] ss:$28 sps:$4 sm:$0xff]  }
 0x388   :  { %1622 = vmatpush1.bf16.msra.mxu0 %v2334_v53  ;;  %v2387_v53 = vld [vmem:[%s3106_s15 + $0x4c] ss:$28 sps:$4 sm:$0xff]  }
 0x389   :  { %1623 = vmatprep.subr.bf16.mxu0 %v2342_v54  ;;  %v2385_v54 = vld [vmem:[%s3106_s15 + $0x48] ss:$28 sps:$4 sm:$0xff]  }
 0x38c   :  { %1624 = vmatpush1.bf16.msra.mxu0 %v2340_v55  ;;  %v2388_v55 = vld [vmem:[%s3106_s15 + $0x50] ss:$28 sps:$4 sm:$0xff]  }
 0x38d   :  { %1625 = vmatprep.subr.bf16.mxu0 %v2348_v56  ;;  %v2391_v56 = vld [vmem:[%s3106_s15 + $0x14] ss:$28 sps:$4 sm:$0xff]  }
 0x390   :  { %1626 = vmatpush1.bf16.msra.mxu0 %v2346_v57  ;;  %v2389_v57 = vld [vmem:[%s3106_s15 + $0x10] ss:$28 sps:$4 sm:$0xff]  }
 0x391   :  { %1627 = vmatprep.subr.bf16.mxu0 %v2354_v16 }
 0x394   :  { %1628 = vmatpush1.bf16.msra.mxu0 %v2352_v18 }
 0x395   :  { %1629 = vmatprep.subr.bf16.mxu0 %v2360_v20 }
 0x398   :  { %1630 = vmatpush1.bf16.msra.mxu0 %v2358_v22 }
 0x399   :  { %2209 = vmatprep.subr.bf16.mxu0 %v2465_v43 }
 0x43b   :  { %v1023_v31 = vpop.f32.mrf.mxu0 }
 0x43c   :  { %v1024_v33 = vadd.f32 %v1919_v30, %v1023_v31 }
 0x43d   :  { %v2189_v32 = vpop.f32.mrf.mxu0 }
 0x43e   :  { %v1030_v37 = vmax.f32 %v1024_v33, 0.0 }
 0x43f   :  { %v1026_v34 = vpop.f32.mrf.mxu0 }
 0x440   :  { %v1027_v35 = vadd.f32 %v1919_v30, %v1026_v34  ;;  %v2361_v34 = vld [vmem:[%s3106_s15 + $0x198] ss:$28 sps:$4 sm:$0xff]  }
 0x441   :  { %v2190_v36 = vpop.f32.mrf.mxu0 }
 0x442   :  { %v1031_v38 = vmax.f32 %v1027_v35, 0.0  ;;  %v2364_v35 = vld [vmem:[%s3106_s15 + $0x1a0] ss:$28 sps:$4 sm:$0xff]  }
 0x444   :  { %v1032_v40 = vpack.c.bf16 %v1031_v38, %v1030_v37  ;;  %v2367_v37 = vld [vmem:[%s3106_s15 + $0x164] ss:$28 sps:$4 sm:$0xff]  }
 0x445   :  { %v2365_v38 = vld [vmem:[%s3106_s15 + $0x160] ss:$28 sps:$4 sm:$0xff]  }
 0x446   :  { %2194 = vmatmul.mubr.msk.bf16.vlgmr.msra.gmra.mxu1 %vm868_vm4, %v1032_v40  ;;  %v2371_v40 = vld [vmem:[%s3106_s15 + $0x12c] ss:$28 sps:$4 sm:$0xff]  }
 0x447   :  { %2198 = vmatpush3.bf16.msra.mxu1 %v2309_v39  ;;  %2205 = vmatprep.mubr.msk.bf16.mxu1 %vm2466_vm0, %v2465_v43  ;;  %v2368_v39 = vld [vmem:[%s3106_s15 + $0x168] ss:$28 sps:$4 sm:$0xff]  }
 0x448   :  { %2199 = vmatprep.subr.bf16.mxu1 %v2465_v43 }
 0x44b   :  { %2200 = vmatpush3.bf16.msra.mxu1 %v2310_v41  ;;  %v2369_v41 = vld [vmem:[%s3106_s15 + $0x128] ss:$28 sps:$4 sm:$0xff]  }
 0x44c   :  { %2201 = vmatprep.subr.bf16.mxu1 %v2465_v43 }
 0x44f   :  { %2202 = vmatpush3.bf16.msra.mxu1 %v2311_v42  ;;  %v2372_v42 = vld [vmem:[%s3106_s15 + $0x130] ss:$28 sps:$4 sm:$0xff]  }
 0x450   :  { %2203 = vmatprep.subr.bf16.mxu1 %v2465_v43 }
 0x453   :  { %2204 = vmatpush3.bf16.msra.mxu1 %v2312_v44  ;;  %v2375_v44 = vld [vmem:[%s3106_s15 + $0xf4] ss:$28 sps:$4 sm:$0xff]  }
 0x454   :  { %1572 = vmatprep.subr.bf16.mxu1 %v2315_v45  ;;  %v2373_v45 = vld [vmem:[%s3106_s15 + $0xf0] ss:$28 sps:$4 sm:$0xff]  }
 0x506   :  { %v1087_v59 = vpop.f32.mrf.mxu1 }
 0x507   :  { %v1088_v61 = vadd.f32 %v1928_v58, %v1087_v59 }
 0x508   :  { %v2195_v60 = vpop.f32.mrf.mxu1 }
 0x509   :  { %v1094_v1 = vmax.f32 %v1088_v61, 0.0 }
 0x50a   :  { %v1090_v62 = vpop.f32.mrf.mxu1 }
 0x50b   :  { %v1091_v63 = vadd.f32 %v1928_v58, %v1090_v62  ;;  %v2392_v58 = vld [vmem:[%s3106_s15 + $0x18] ss:$28 sps:$4 sm:$0xff]  }
 0x50c   :  { %v2196_v0 = vpop.f32.mrf.mxu1 }
 0x50d   :  { %v1095_v2 = vmax.f32 %v1091_v63, 0.0 }
 0x50f   :  { %v1096_v4 = vpack.c.bf16 %v1095_v2, %v1094_v1 }
 0x511   :  { %2206 = vmatmul.mubr.msk.bf16.vlgmr.msra.gmra.mxu1 %vm806_vm2, %v1096_v4 }
 0x512   :  { %1573 = vmatpush1.bf16.msra.mxu1 %v2313_v3  ;;  %1604 = vmatprep.mubr.bf16.mxu1 %v2467_v24 }
 0x513   :  { %1574 = vmatprep.subr.bf16.mxu1 %v2321_v5 }
 0x516   :  { %1575 = vmatpush1.bf16.msra.mxu1 %v2319_v6 }
 0x517   :  { %1576 = vmatprep.subr.bf16.mxu1 %v2327_v7 }
 0x51a   :  { %1577 = vmatpush1.bf16.msra.mxu1 %v2325_v8 }
 0x51b   :  { %1578 = vmatprep.subr.bf16.mxu1 %v2333_v9 }
 0x51e   :  { %1579 = vmatpush1.bf16.msra.mxu1 %v2331_v10 }
 0x51f   :  { %1580 = vmatprep.subr.bf16.mxu1 %v2339_v11 }
 0x522   :  { %1581 = vmatpush1.bf16.msra.mxu1 %v2337_v12 }
 0x523   :  { %1582 = vmatprep.subr.bf16.mxu1 %v2345_v13 }
 0x526   :  { %1583 = vmatpush1.bf16.msra.mxu1 %v2343_v14 }
 0x527   :  { %1584 = vmatprep.subr.bf16.mxu1 %v2351_v15 }
 0x52a   :  { %1585 = vmatpush1.bf16.msra.mxu1 %v2349_v17 }
 0x52b   :  { %1586 = vmatprep.subr.bf16.mxu1 %v2357_v19 }
 0x52e   :  { %1587 = vmatpush1.bf16.msra.mxu1 %v2355_v21 }
 0x52f   :  { %1658 = vmatprep.subr.bf16.mxu1 %v2363_v23 }
 0x5d1   :  { %v1173_v26 = vpop.f32.mrf.mxu1 }
 0x5d2   :  { %v1174_v28 = vadd.f32 %v1931_v25, %v1173_v26 }
 0x5d3   :  { %v2207_v27 = vpop.f32.mrf.mxu1 }
 0x5d4   :  { %v1180_v32 = vmax.f32 %v1174_v28, 0.0 }
 0x5d5   :  { %v1176_v29 = vpop.f32.mrf.mxu1 }
 0x5d6   :  { %v1177_v30 = vadd.f32 %v1931_v25, %v1176_v29 }
 0x5d7   :  { %v2208_v31 = vpop.f32.mrf.mxu1 }
 0x5d8   :  { %v1181_v33 = vmax.f32 %v1177_v30, 0.0 }
 0x5da   :  { %v1182_v36 = vpack.c.bf16 %v1181_v33, %v1180_v32 }
 0x5dc   :  { %1605 = vmatmul.mubr.bf16.vlgmr.msra.gmra.mxu1 %v1182_v36  ;;  %1648 = vmatmul.mubr.bf16.vlgmr.msra.gmra.mxu0 %v1182_v36 }
 0x5dd   :  { %1659 = vmatpush1.bf16.msra.mxu1 %v2361_v34  ;;  %2210 = vmatpush3.bf16.msra.mxu0 %v2364_v35 }
 0x5de   :  { %1660 = vmatprep.subr.bf16.mxu1 %v2367_v37  ;;  %2211 = vmatprep.subr.bf16.mxu0 %v2465_v43 }
 0x5df   :  { %1690 = vmatprep.mubr.bf16.mxu1 %v2467_v24  ;;  %2225 = vmatprep.mubr.msk.bf16.mxu0 %vm2466_vm0, %v2465_v43 }
 0x5e1   :  { %1661 = vmatpush1.bf16.msra.mxu1 %v2365_v38  ;;  %2212 = vmatpush3.bf16.msra.mxu0 %v2368_v39 }
 0x5e2   :  { %1662 = vmatprep.subr.bf16.mxu1 %v2371_v40  ;;  %2213 = vmatprep.subr.bf16.mxu0 %v2465_v43 }
 0x5e5   :  { %1663 = vmatpush1.bf16.msra.mxu1 %v2369_v41  ;;  %2214 = vmatpush3.bf16.msra.mxu0 %v2372_v42 }
 0x5e6   :  { %1664 = vmatprep.subr.bf16.mxu1 %v2375_v44  ;;  %2215 = vmatprep.subr.bf16.mxu0 %v2465_v43 }
 0x5e9   :  { %1665 = vmatpush1.bf16.msra.mxu1 %v2373_v45  ;;  %2216 = vmatpush3.bf16.msra.mxu0 %v2376_v46 }
 0x5ea   :  { %1666 = vmatprep.subr.bf16.mxu1 %v2379_v47  ;;  %2217 = vmatprep.subr.bf16.mxu0 %v2465_v43 }
 0x5ed   :  { %1667 = vmatpush1.bf16.msra.mxu1 %v2377_v48  ;;  %2218 = vmatpush3.bf16.msra.mxu0 %v2380_v49 }
 0x5ee   :  { %1668 = vmatprep.subr.bf16.mxu1 %v2383_v50  ;;  %2219 = vmatprep.subr.bf16.mxu0 %v2465_v43 }
 0x5f1   :  { %1669 = vmatpush1.bf16.msra.mxu1 %v2381_v51  ;;  %2220 = vmatpush3.bf16.msra.mxu0 %v2384_v52 }
 0x5f2   :  { %1670 = vmatprep.subr.bf16.mxu1 %v2387_v53  ;;  %2221 = vmatprep.subr.bf16.mxu0 %v2465_v43 }
 0x5f5   :  { %1671 = vmatpush1.bf16.msra.mxu1 %v2385_v54  ;;  %2222 = vmatpush3.bf16.msra.mxu0 %v2388_v55 }
 0x5f6   :  { %1672 = vmatprep.subr.bf16.mxu1 %v2391_v56  ;;  %2223 = vmatprep.subr.bf16.mxu0 %v2465_v43 }
 0x5f9   :  { %1673 = vmatpush1.bf16.msra.mxu1 %v2389_v57  ;;  %2224 = vmatpush3.bf16.msra.mxu0 %v2392_v58 }
 0x5fc   :  { %1691 = vmatmul.mubr.bf16.vlgmr.msra.gmra.mxu1 %v1182_v36  ;;  %2226 = vmatmul.mubr.bf16.vlgmr.msra.gmra.mxu0 %v1182_v36 }
 0x5fd   :  { %2432 = shalt.err (!%p2429_p4)
}
 0x5fe   :  { %s2469_s4 = smov 64   ;;  %s2470_s19 = smov 4   ;;  %v1249_v43 = vlaneseq  ;;  %v1247_v62 = vld [vmem:[%s3107_s16] sm:$0x7f]  ;;  %vm1812_vm5 = vcmask 125952  }
 0x5ff   :  { %1829 = dma.vmem_to_hbm [thread:$0]  %s1824_s5, 128, %s3108_s17, [#allocation3], %s2469_s4, %s2469_s4, %s2470_s19  }
 0x600   :  { %v1250_v59 = vshrl.u32 %v1249_v43, 7  ;;  %s2471_s16 = smov [#allocation4]  }
 0x601   :  { %s1835_s17 = sshll.u32 %s2471_s16, 4  ;;  %s1836_s17 = int_to_ptr.vmem [resolvable:$true] %s1835_s17 }
 0x602   :  { %v1251_v60 = vsub.s32 0, %v1250_v59  ;;  %v1259_v61 = vsub.s32 2, %v1250_v59  ;;  %v1255_v63 = vsub.s32 1, %v1250_v59  ;;  %v1263_v0 = vsub.s32 3, %v1250_v59  ;;  %s2441_s1 = scalar_lea.vmem %s1836_s17, 896  ;;  %p2446_p6 = scmp.lt.s32.totalorder %s1836_s17, %s1836_s17 }
 0x603   :  { %v1267_v33 = vsub.s32 4, %v1250_v59  ;;  %v1275_v34 = vsub.s32 6, %v1250_v59  ;;  %v1271_v35 = vsub.s32 5, %v1250_v59  ;;  %p2442_p5 = scmp.ne.s32.totalorder %s1836_s17, %s2441_s1  ;;  %p2447_p7 = scmp.lt.s32.totalorder %s2441_s1, %s2441_s1 }
 0x604   :  { %v1252_v1 = vrot.slane %v1247_v62, %v1251_v60  ;;  %v1260_v2 = vrot.slane %v1247_v62, %v1259_v61  ;;  %v1256_v3 = vrot.slane %v1247_v62, %v1255_v63  ;;  %v1264_v4 = vrot.slane %v1247_v62, %v1263_v0 }
 0x605   :  { %v1268_v36 = vrot.slane %v1247_v62, %v1267_v33  ;;  %v1276_v37 = vrot.slane %v1247_v62, %v1275_v34  ;;  %v1272_v38 = vrot.slane %v1247_v62, %v1271_v35  ;;  %p2448_p8 = por %p2447_p7, %p2446_p6 }
 0x607   :  { %p2449_p9 = pnand %p2448_p8, %p2442_p5 }
 0x69c   :  { %v1606_v5 = vpop.f32.mrf.mxu1  ;;  %v1649_v6 = vpop.f32.mrf.mxu0 }
 0x69d   :  { %v1607_v7 = vadd.f32 %v1606_v5, %v1252_v1  ;;  %v1650_v8 = vadd.f32 %v1649_v6, %v1260_v2 }
 0x69e   :  { %v1608_v9 = vpop.f32.mrf.mxu1  ;;  %v1651_v10 = vpop.f32.mrf.mxu0 }
 0x69f   :  { %2393 = vtanh.f32 %v1607_v7  ;;  %v1609_v11 = vadd.f32 %v1608_v9, %v1256_v3  ;;  %v1652_v12 = vadd.f32 %v1651_v10, %v1264_v4 }
 0x6a0   :  { %2395 = vtanh.f32 %v1650_v8  ;;  %v1610_v13 = vpop.f32.mrf.mxu1  ;;  %v1653_v14 = vpop.f32.mrf.mxu0 }
 0x6a1   :  { %2397 = vtanh.f32 %v1609_v11  ;;  %v1611_v15 = vadd.f32 %v1610_v13, %v1252_v1  ;;  %v1654_v16 = vadd.f32 %v1653_v14, %v1260_v2 }
 0x6a2   :  { %2399 = vtanh.f32 %v1652_v12  ;;  %v1612_v17 = vpop.f32.mrf.mxu1  ;;  %v1655_v18 = vpop.f32.mrf.mxu0 }
 0x6a3   :  { %2401 = vtanh.f32 %v1611_v15  ;;  %v1613_v19 = vadd.f32 %v1612_v17, %v1256_v3  ;;  %v1656_v20 = vadd.f32 %v1655_v18, %v1264_v4 }
 0x6a4   :  { %2403 = vtanh.f32 %v1654_v16 }
 0x6a5   :  { %2405 = vtanh.f32 %v1613_v19 }
 0x6a6   :  { %2407 = vtanh.f32 %v1656_v20 }
 0x6ac   :  { %v2394_v21 = vpop.eup %2393 }
 0x6ad   :  { %v2396_v22 = vpop.eup %2395 }
 0x6ae   :  { %v2398_v23 = vpop.eup %2397 }
 0x6af   :  { %v2400_v24 = vpop.eup %2399  ;;  %v2005_v25 = vpack.c.bf16 %v2398_v23, %v2394_v21 }
 0x6b0   :  { %v2402_v26 = vpop.eup %2401  ;;  %v2006_v27 = vpack.c.bf16 %v2400_v24, %v2396_v22 }
 0x6b1   :  { %v2404_v28 = vpop.eup %2403  ;;  %1809 = vst [vmem:[#allocation4] sm:$0xff] %v2005_v25 }
 0x6b2   :  { %v2406_v29 = vpop.eup %2405  ;;  %1810 = vst [vmem:[#allocation4 + $0x8] sm:$0xff] %v2006_v27 }
 0x6b3   :  { %v2408_v30 = vpop.eup %2407  ;;  %v2009_v31 = vpack.c.bf16 %v2406_v29, %v2402_v26 }
 0x6b4   :  { %v2010_v32 = vpack.c.bf16 %v2408_v30, %v2404_v28 }
 0x6b5   :  { %1814 = vst [vmem:[#allocation4 + $0x1c] sm:$0xff] %v2009_v31 }
 0x6b6   :  { %1815 = vst [vmem:[#allocation4 + $0x24] sm:$0xff] %v2010_v32 }
 0x6bc   :  { %v1692_v39 = vpop.f32.mrf.mxu1  ;;  %v1735_v40 = vpop.f32.mrf.mxu0 }
 0x6bd   :  { %v1693_v41 = vadd.f32 %v1692_v39, %v1268_v36  ;;  %v1736_v42 = vadd.f32 %v1735_v40, %v1276_v37 }
 0x6be   :  { %v1694_v44 = vpop.f32.mrf.mxu1  ;;  %v2227_v45 = vpop.f32.mrf.mxu0 }
 0x6bf   :  { %2409 = vtanh.f32 %v1693_v41  ;;  %v1695_v46 = vadd.f32 %v1694_v44, %v1272_v38 }
 0x6c0   :  { %2411 = vtanh.f32 %v1736_v42  ;;  %v1696_v47 = vpop.f32.mrf.mxu1  ;;  %v1738_v48 = vpop.f32.mrf.mxu0 }
 0x6c1   :  { %2413 = vtanh.f32 %v1695_v46  ;;  %v1697_v49 = vadd.f32 %v1696_v47, %v1268_v36  ;;  %v1739_v50 = vadd.f32 %v1738_v48, %v1276_v37 }
 0x6c2   :  { %v1698_v51 = vpop.f32.mrf.mxu1  ;;  %v2228_v52 = vpop.f32.mrf.mxu0 }
 0x6c3   :  { %2415 = vtanh.f32 %v1697_v49  ;;  %v1699_v53 = vadd.f32 %v1698_v51, %v1272_v38 }
 0x6c4   :  { %2417 = vtanh.f32 %v1739_v50 }
 0x6c5   :  { %2419 = vtanh.f32 %v1699_v53 }
 0x6cc   :  { %v2410_v54 = vpop.eup %2409 }
 0x6cd   :  { %v2412_v55 = vpop.eup %2411 }
 0x6ce   :  { %v2414_v56 = vpop.eup %2413  ;;  %v2008_v57 = vpack.c.bf16 %v2412_v55, %v2412_v55 }
 0x6cf   :  { %v2007_v58 = vpack.c.bf16 %v2414_v56, %v2410_v54 }
 0x6d0   :  { %v2416_v43 = vpop.eup %2415  ;;  %1813 = vst.msk [vmem:[#allocation4 + $0x18] sm:$0xf] %vm1812_vm5, %v2008_v57 }
 0x6d1   :  { %v2418_v59 = vpop.eup %2417  ;;  %1811 = vst [vmem:[#allocation4 + $0x10] sm:$0xff] %v2007_v58 }
 0x6d2   :  { %v2420_v60 = vpop.eup %2419  ;;  %v2012_v61 = vpack.c.bf16 %v2418_v59, %v2418_v59 }
 0x6d3   :  { %v2011_v62 = vpack.c.bf16 %v2420_v60, %v2416_v43 }
 0x6d4   :  { %1817 = vst.msk [vmem:[#allocation4 + $0x34] sm:$0xf] %vm1812_vm5, %v2012_v61 }
 0x6d5   :  { %1816 = vst [vmem:[#allocation4 + $0x2c] sm:$0xff] %v2011_v62 }
 0x6d6   :  { %2452 = shalt.err (!%p2449_p9)
}
 0x6d7   :  { %s2472_s10 = smov 448   ;;  %s2473_s11 = smov 28  }
 0x6d8   :  { %1841 = dma.vmem_to_hbm [thread:$0]  %s1836_s17, 896, %s3109_s18, [#allocation5], %s2472_s10, %s2472_s10, %s2473_s11  }
 0x6d9   :  { %2461 = dma.done.wait [#allocation3], 128  }
 0x6da   :  { %2462 = vsyncadd [#allocation3], 4294967168 }
 0x6db   :  { %2463 = dma.done.wait [#allocation5], 896  }
 0x6dc   :  { %2464 = vsyncadd [#allocation5], 4294966400 }
 0x6dd   :  { %1848 = vsyncpa [#allocation3], 1 }
 0x6de   :  { %1849 = vsyncpa [#allocation5], 1 }

</bundles_post_ra>
